<compile_context>
chip_gen: v5e
topology: v5e:2x2
jax: 0.10.0
libtpu: 0.0.40
codegen_flags: <defaults>
</compile_context>

<pallas_src>
import jax
import jax.numpy as jnp
from jax import lax
from jax.experimental import pallas as pl
from jax.experimental.pallas import tpu as pltpu


def _round_up(x: int, m: int) -> int:
    return ((x + m - 1) // m) * m


def _best_tile(dim_padded: int, unit: int, cap: int, min_grid: int = 1) -> int:
    """Largest tile t such that: t is a multiple of `unit`, t divides `dim_padded`,
    t <= cap, and dim_padded // t >= min_grid. Falls back to `unit`."""
    q = dim_padded // unit
    for m in range(q, 0, -1):
        if q % m == 0:
            t = m * unit
            if t <= cap and (dim_padded // t) >= min_grid:
                return t
    return unit


def _linear_kernel_direct(x_ref, w_ref, b_ref, o_ref):
    # Single K step: write the (tm, tn) tile directly — no accumulator scratch,
    # no zero-fill, no pl.when branches (overhead win on small shapes).
    acc = lax.dot_general(
        x_ref[...],
        w_ref[...],
        dimension_numbers=(((1,), (1,)), ((), ())),  # contract in_dim of x and W
        preferred_element_type=jnp.float32,
        precision=lax.Precision.HIGHEST,
    )
    o_ref[...] = (acc + b_ref[...]).astype(o_ref.dtype)


def _linear_kernel_acc(x_ref, w_ref, b_ref, o_ref, acc_ref):
    # x_ref: (tm, tk), w_ref: (tn, tk) [PyTorch layout], b_ref: (1, tn), o_ref: (tm, tn)
    @pl.when(pl.program_id(2) == 0)
    def _init():
        acc_ref[...] = jnp.zeros_like(acc_ref)

    acc_ref[...] += lax.dot_general(
        x_ref[...],
        w_ref[...],
        dimension_numbers=(((1,), (1,)), ((), ())),
        preferred_element_type=jnp.float32,
        precision=lax.Precision.HIGHEST,
    )

    @pl.when(pl.program_id(2) == pl.num_programs(2) - 1)
    def _finish():
        o_ref[...] = (acc_ref[...] + b_ref[...]).astype(o_ref.dtype)


def single_layer_classifier(x, weight, bias, *, weights_in_bf16=False):
    """Forward pass of SingleLayerClassifier.

    x:      (B, in_dim)            float32
    weight: (num_classes, in_dim)  (PyTorch nn.Linear convention, used untransposed)
    bias:   (num_classes,)
    returns (B, num_classes) logits (dtype of x)
    """
    B, in_dim = x.shape
    num_classes, in_dim_w = weight.shape
    assert in_dim_w == in_dim

    # Pad only to hardware layout units: M -> 8 (sublane), N/K -> 128 (lane).
    Mp = _round_up(B, 8)
    Np = _round_up(num_classes, 128)
    Kp = _round_up(in_dim, 128)

    # Tile caps sized for the smallest-VMEM generation (v7x, 64 MiB physical):
    # worst-case double-buffered footprint ~44 MiB < 48 MiB limit below.
    TM_CAP, TN_CAP, TK_CAP = 1024, 1024, 2048

    if Mp > TM_CAP:
        tm = TM_CAP
        Mp = _round_up(Mp, tm)  # pad x rows (cheap) rather than re-streaming W
    else:
        tm = Mp

    # Keep the N grid >= 2 when Np >= 256 so the "parallel" j axis can shard
    # across v7x's two TensorCores.
    tn = _best_tile(Np, 128, TN_CAP, min_grid=2 if Np >= 256 else 1)
    tk = _best_tile(Kp, 128, TK_CAP, min_grid=1)

    stream_dtype = jnp.bfloat16 if weights_in_bf16 else x.dtype
    # Zero padding along in_dim contributes 0 to the contraction; padded output
    # rows/cols are sliced off afterwards.
    x_p = jnp.pad(x, ((0, Mp - B), (0, Kp - in_dim))).astype(stream_dtype)
    w_p = jnp.pad(weight, ((0, Np - num_classes), (0, Kp - in_dim))).astype(stream_dtype)
    b_p = jnp.pad(bias, (0, Np - num_classes)).reshape(1, Np).astype(jnp.float32)

    grid_k = Kp // tk
    grid = (Mp // tm, Np // tn, grid_k)

    common = dict(
        out_shape=jax.ShapeDtypeStruct((Mp, Np), x.dtype),
        grid=grid,
        in_specs=[
            pl.BlockSpec((tm, tk), lambda i, j, k: (i, k)),   # x tile
            pl.BlockSpec((tn, tk), lambda i, j, k: (j, k)),   # weight tile (native layout)
            pl.BlockSpec((1, tn), lambda i, j, k: (0, j)),    # bias tile
        ],
        out_specs=pl.BlockSpec((tm, tn), lambda i, j, k: (i, j)),
        compiler_params=pltpu.CompilerParams(
            dimension_semantics=("parallel", "parallel", "arbitrary"),
            vmem_limit_bytes=48 * 1024 * 1024,
        ),
    )

    if grid_k == 1:
        out_p = pl.pallas_call(_linear_kernel_direct, **common)(x_p, w_p, b_p)
    else:
        out_p = pl.pallas_call(
            _linear_kernel_acc,
            scratch_shapes=[pltpu.VMEM((tm, tn), jnp.float32)],
            **common,
        )(x_p, w_p, b_p)

    return out_p[:B, :num_classes]


def init_params(key, in_dim, num_classes):
    """Deterministic init matching the module's scheme:
    xavier_normal_ for the Linear weight, uniform_ (U[0,1)) for the bias."""
    kw, kb = jax.random.split(key)
    std = (2.0 / (in_dim + num_classes)) ** 0.5  # xavier normal, gain=1
    weight = std * jax.random.normal(kw, (num_classes, in_dim), dtype=jnp.float32)
    bias = jax.random.uniform(kb, (num_classes,), dtype=jnp.float32)
    return weight, bias


if __name__ == "__main__":
    key = jax.random.PRNGKey(0)
    kx, kp, kx2, kp2 = jax.random.split(key, 4)

    # Small shapes consistent with the module (dummy single-layer classifier).
    B, in_dim, num_classes = 8, 32, 8
    x = jax.random.normal(kx, (B, in_dim), dtype=jnp.float32)
    weight, bias = init_params(kp, in_dim, num_classes)

    logits = single_layer_classifier(x, weight, bias)
    jax.block_until_ready(logits)

    ref = jnp.matmul(x, weight.T, precision=lax.Precision.HIGHEST) + bias
    assert logits.shape == (B, num_classes)
    assert jnp.allclose(logits, ref, atol=1e-5, rtol=1e-5)

    # Second check: non-multiple-of-128 N/K (padding + slice), forced >=2-way N split,
    # and K grid > 1 (accumulator kernel path).
    B2, in_dim2, num_classes2 = 24, 2500, 250
    x2 = jax.random.normal(kx2, (B2, in_dim2), dtype=jnp.float32)
    weight2, bias2 = init_params(kp2, in_dim2, num_classes2)

    logits2 = single_layer_classifier(x2, weight2, bias2)
    jax.block_until_ready(logits2)

    ref2 = jnp.matmul(x2, weight2.T, precision=lax.Precision.HIGHEST) + bias2
    assert logits2.shape == (B2, num_classes2)
    assert jnp.allclose(logits2, ref2, atol=1e-4, rtol=1e-4)

    print("KERNEL_OK")
</pallas_src>

<mosaic_0001>
module attributes {stable_mosaic.version = 11 : i64} {
  func.func @_linear_kernel_direct(%arg0: i32, %arg1: i32, %arg2: i32, %arg3: memref<8x128xf32, #tpu.memory_space<vmem>>, %arg4: memref<128x128xf32, #tpu.memory_space<vmem>>, %arg5: memref<1x128xf32, #tpu.memory_space<vmem>>, %arg6: memref<8x128xf32, #tpu.memory_space<vmem>>) attributes {dimension_semantics = [#tpu.dimension_semantics<parallel>, #tpu.dimension_semantics<parallel>, #tpu.dimension_semantics<arbitrary>], iteration_bounds = array<i64: 1, 1, 1>, scalar_prefetch = 0 : i64, scratch_operands = 0 : i64, tpu.core_type = #tpu.core_type<tc>, window_params = [{transform_indices = @transform_0, window_bounds = array<i64: 8, 128>}, {transform_indices = @transform_1, window_bounds = array<i64: 128, 128>}, {transform_indices = @transform_2, window_bounds = array<i64: 1, 128>}, {transform_indices = @transform_3, window_bounds = array<i64: 8, 128>}]} {
    %c0 = arith.constant 0 : index
    %c0_0 = arith.constant 0 : index
    %0 = vector.load %arg3[%c0, %c0_0] : memref<8x128xf32, #tpu.memory_space<vmem>>, vector<8x128xf32>
    %c0_1 = arith.constant 0 : index
    %c0_2 = arith.constant 0 : index
    %1 = vector.load %arg4[%c0_1, %c0_2] : memref<128x128xf32, #tpu.memory_space<vmem>>, vector<128x128xf32>
    %cst = arith.constant dense<0.000000e+00> : vector<8x128xf32>
    %2 = tpu.matmul %0, %1, %cst {dimension_numbers = #tpu.dot_dimension_numbers<[1], [1], [0], [0], [0, 0, 1, 0], [], []>, precision = #tpu.contract_precision<fp32>} : vector<8x128xf32>, vector<128x128xf32>, vector<8x128xf32> -> vector<8x128xf32>
    %c0_3 = arith.constant 0 : index
    %c0_4 = arith.constant 0 : index
    %3 = vector.load %arg5[%c0_3, %c0_4] : memref<1x128xf32, #tpu.memory_space<vmem>>, vector<1x128xf32>
    %4 = vector.broadcast %3 : vector<1x128xf32> to vector<8x128xf32>
    %5 = arith.addf %2, %4 : vector<8x128xf32>
    %c0_5 = arith.constant 0 : index
    %c0_6 = arith.constant 0 : index
    %6 = vector.load %arg6[%c0_5, %c0_6] : memref<8x128xf32, #tpu.memory_space<vmem>>, vector<8x128xf32>
    tpu.vector_store %arg6[%c0_5, %c0_6], %5 {strides = array<i32>} : memref<8x128xf32, #tpu.memory_space<vmem>>, vector<8x128xf32>,
    return
  }
  func.func @transform_0(%arg0: i32, %arg1: i32, %arg2: i32) -> (i32, i32) {
    %c0_i32 = arith.constant 0 : i32
    return %arg0, %arg2 : i32, i32
  }
  func.func @transform_1(%arg0: i32, %arg1: i32, %arg2: i32) -> (i32, i32) {
    %c0_i32 = arith.constant 0 : i32
    return %arg1, %arg2 : i32, i32
  }
  func.func @transform_2(%arg0: i32, %arg1: i32, %arg2: i32) -> (i32, i32) {
    %c0_i32 = arith.constant 0 : i32
    %c0_i32_0 = arith.constant 0 : i32
    return %c0_i32, %arg1 : i32, i32
  }
  func.func @transform_3(%arg0: i32, %arg1: i32, %arg2: i32) -> (i32, i32) {
    %c0_i32 = arith.constant 0 : i32
    return %arg0, %arg1 : i32, i32
  }
}

</mosaic_0001>

<bundles_post_ra>
// kernel: tpu_custom_call.1
= control target key start
LH: loop header
LB: loop body
LE: loop exit
PB: predicated region body
PF: predicated region fallthrough
CT: control target
= control target key end

     0   :  { %8 = vsyncpa [#allocation3], 0  ;;  %s774_s0 = inlined_call_operand.hbm [shape: f32[8,128], index: 0, kind: input, shape index: {}]   ;;  %s775_s1 = inlined_call_operand.hbm [shape: f32[128,128], index: 1, kind: input, shape index: {}]   ;;  %s776_s2 = inlined_call_operand.vmem [shape: f32[1,128], index: 2, kind: input, shape index: {}]   ;;  %s777_s3 = inlined_call_operand.hbm [shape: f32[8,128], index: 3, kind: output, shape index: {}]  }
   0x1   :  { %9 = vsyncpa [#allocation6], 0 }
   0x2   :  { %10 = vsyncpa [#allocation4], 0  ;;  %s16_s14 = sshll.u32 %s774_s0, 4  ;;  %s510_s15 = smov [#allocation2]   ;;  %s17_s14 = int_to_ptr.hbm [resolvable:$true] %s16_s14 }
   0x3   :  { %s18_s16 = sshll.u32 %s510_s15, 4  ;;  %s26_s19 = sshll.u32 %s775_s1, 4  ;;  %s19_s16 = int_to_ptr.vmem [resolvable:$true] %s18_s16  ;;  %s27_s19 = int_to_ptr.hbm [resolvable:$true] %s26_s19 }
   0x4   :  { %21 = dma.hbm_to_vmem [thread:$0]  %s17_s14, 128, %s19_s16, [#allocation3]  }
   0x5   :  { %s511_s20 = smov [#allocation5]   ;;  %s512_s22 = smov 128  }
   0x6   :  { %s28_s21 = sshll.u32 %s511_s20, 4  ;;  %s513_s23 = smov 8   ;;  %s29_s21 = int_to_ptr.vmem [resolvable:$true] %s28_s21 }
   0x7   :  { %34 = dma.hbm_to_vmem [thread:$0]  %s27_s19, 2048, %s29_s21, [#allocation6], %s512_s22, %s512_s22, %s513_s23  }
   0x8   :  { %504 = dma.done.wait [#allocation3], 128  }
   0x9   :  { %505 = vsyncadd [#allocation3], 4294967168 }
   0xa   :  { %506 = dma.done.wait [#allocation6], 2048  }
   0xb   :  { %507 = vsyncadd [#allocation6], 4294965248  ;;  %v61_v0 = vld [vmem:[#allocation5 + $0x78] sm:$0xff]  ;;  %v60_v1 = vld [vmem:[#allocation5 + $0x70] sm:$0xff]  ;;  %s514_s24 = smov [#allocation7]   ;;  %s415_s28 = sshll.u32 %s777_s3, 4  ;;  %s416_s28 = int_to_ptr.hbm [resolvable:$true] %s415_s28 }
   0xc   :  { %v59_v2 = vld [vmem:[#allocation5 + $0x68] sm:$0xff]  ;;  %v541_v3 = vand.u32 4294901760, %v61_v0  ;;  %v543_v4 = vand.u32 4294901760, %v60_v1  ;;  %v58_v6 = vld [vmem:[#allocation5 + $0x60] sm:$0xff]  ;;  %v57_v11 = vld [vmem:[#allocation5 + $0x58] sm:$0xff]  ;;  %s413_s25 = sshll.u32 %s514_s24, 4  ;;  %s414_s25 = int_to_ptr.vmem [resolvable:$true] %s413_s25 }
   0xd   :  { %v545_v5 = vand.u32 4294901760, %v59_v2  ;;  %v557_v10 = vand.u32 4294901760, %v58_v6  ;;  %v563_v14 = vand.u32 4294901760, %v57_v11  ;;  %v56_v19 = vld [vmem:[#allocation5 + $0x50] sm:$0xff]  ;;  %v55_v26 = vld [vmem:[#allocation5 + $0x48] sm:$0xff]  ;;  %v54_v32 = vld [vmem:[#allocation5 + $0x40] sm:$0xff] }
   0xe   :  { %67 = vmatpush.xpose.msra.mxu0 %v541_v3  ;;  %v549_v7 = vsub.f32 %v61_v0, %v541_v3  ;;  %v552_v8 = vsub.f32 %v60_v1, %v543_v4  ;;  %263 = vmatpush.xpose.msra.mxu3 %v541_v3  ;;  %v578_v21 = vand.u32 4294901760, %v56_v19  ;;  %v590_v27 = vand.u32 4294901760, %v55_v26  ;;  %v53_v38 = vld [vmem:[#allocation5 + $0x38] sm:$0xff]  ;;  %v52_v44 = vld [vmem:[#allocation5 + $0x30] sm:$0xff]  ;;  %v51_v50 = vld [vmem:[#allocation5 + $0x28] sm:$0xff] }
   0xf   :  { %v555_v9 = vsub.f32 %v59_v2, %v545_v5  ;;  %v574_v18 = vsub.f32 %v58_v6, %v557_v10  ;;  %v586_v25 = vsub.f32 %v57_v11, %v563_v14  ;;  %v602_v33 = vand.u32 4294901760, %v54_v32  ;;  %v50_v56 = vld [vmem:[#allocation5 + $0x20] sm:$0xff]  ;;  %v49_v62 = vld [vmem:[#allocation5 + $0x18] sm:$0xff]  ;;  %v48_v11 = vld [vmem:[#allocation5 + $0x10] sm:$0xff] }
  0x10   :  { %v109_v12 = vand.u32 4294901760, %v549_v7  ;;  %v115_v13 = vand.u32 4294901760, %v552_v8  ;;  %210 = vmatpush.xpose.msra.mxu2 %v549_v7  ;;  %v598_v31 = vsub.f32 %v56_v19, %v578_v21  ;;  %v610_v37 = vsub.f32 %v55_v26, %v590_v27 }
  0x11   :  { %v121_v17 = vand.u32 4294901760, %v555_v9  ;;  %v127_v24 = vand.u32 4294901760, %v574_v18  ;;  %v133_v30 = vand.u32 4294901760, %v586_v25  ;;  %v615_v39 = vsub.f32 %v54_v32, %v602_v33 }
  0x12   :  { %v110_v15 = vsub.f32 %v549_v7, %v109_v12  ;;  %69 = vmatpush.xpose.msra.mxu0 %v543_v4  ;;  %v116_v16 = vsub.f32 %v552_v8, %v115_v13  ;;  %265 = vmatpush.xpose.msra.mxu3 %v543_v4  ;;  %v139_v36 = vand.u32 4294901760, %v598_v31  ;;  %v145_v42 = vand.u32 4294901760, %v610_v37  ;;  %v45_v7 = vld [vmem:[#allocation2] sm:$0xff] }
  0x13   :  { %v122_v23 = vsub.f32 %v555_v9, %v121_v17  ;;  %v128_v29 = vsub.f32 %v574_v18, %v127_v24  ;;  %v134_v35 = vsub.f32 %v586_v25, %v133_v30  ;;  %v622_v43 = vand.u32 4294901760, %v53_v38 }
  0x14   :  { %v111_v20 = vand.u32 4294901760, %v110_v15  ;;  %213 = vmatpush.xpose.msra.mxu2 %v552_v8  ;;  %v117_v22 = vand.u32 4294901760, %v116_v16  ;;  %v140_v41 = vsub.f32 %v598_v31, %v139_v36  ;;  %v151_v45 = vand.u32 4294901760, %v615_v39 }
  0x15   :  { %v123_v28 = vand.u32 4294901760, %v122_v23  ;;  %v129_v34 = vand.u32 4294901760, %v128_v29  ;;  %v135_v40 = vand.u32 4294901760, %v134_v35  ;;  %v146_v47 = vsub.f32 %v610_v37, %v145_v42  ;;  %v47_v23 = vld [vmem:[#allocation5 + $0x8] sm:$0xff]  ;;  %v46_v35 = vld [vmem:[#allocation5] sm:$0xff] }
  0x16   :  { %112 = vmatpush.xpose.msra.mxu1 %v111_v20  ;;  %71 = vmatpush.xpose.msra.mxu0 %v545_v5  ;;  %v141_v46 = vand.u32 4294901760, %v140_v41  ;;  %v632_v48 = vsub.f32 %v53_v38, %v622_v43  ;;  %v634_v49 = vand.u32 4294901760, %v52_v44  ;;  %v152_v51 = vsub.f32 %v615_v39, %v151_v45 }
  0x17   :  { %267 = vmatpush.xpose.msra.mxu3 %v545_v5  ;;  %v147_v52 = vand.u32 4294901760, %v146_v47  ;;  %v646_v55 = vand.u32 4294901760, %v51_v50  ;;  %v650_v57 = vand.u32 4294901760, %v50_v56  ;;  %v670_v6 = vand.u32 4294901760, %v49_v62 }
  0x18   :  { %216 = vmatpush.xpose.msra.mxu2 %v555_v9  ;;  %v157_v53 = vand.u32 4294901760, %v632_v48  ;;  %v644_v54 = vsub.f32 %v52_v44, %v634_v49  ;;  %v153_v58 = vand.u32 4294901760, %v152_v51  ;;  %v431_v9 = vld [vmem:[%s776_s2] ss:$0 sm:$0xff] }
  0x19   :  { %v658_v61 = vsub.f32 %v51_v50, %v646_v55  ;;  %v663_v63 = vsub.f32 %v50_v56, %v650_v57  ;;  %v680_v20 = vsub.f32 %v49_v62, %v670_v6 }
  0x1a   :  { %118 = vmatpush.xpose.msra.mxu1 %v117_v22  ;;  %73 = vmatpush.xpose.msra.mxu0 %v557_v10  ;;  %v158_v59 = vsub.f32 %v632_v48, %v157_v53  ;;  %v163_v60 = vand.u32 4294901760, %v644_v54  ;;  %v682_v22 = vand.u32 4294901760, %v48_v11 }
  0x1b   :  { %269 = vmatpush.xpose.msra.mxu3 %v557_v10  ;;  %v169_v2 = vand.u32 4294901760, %v658_v61  ;;  %v175_v15 = vand.u32 4294901760, %v663_v63  ;;  %v181_v29 = vand.u32 4294901760, %v680_v20 }
  0x1c   :  { %219 = vmatpush.xpose.msra.mxu2 %v574_v18  ;;  %v159_v0 = vand.u32 4294901760, %v158_v59  ;;  %v164_v1 = vsub.f32 %v644_v54, %v163_v60  ;;  %v692_v32 = vsub.f32 %v48_v11, %v682_v22 }
  0x1d   :  { %v170_v19 = vsub.f32 %v658_v61, %v169_v2  ;;  %v176_v26 = vsub.f32 %v663_v63, %v175_v15 }
  0x1e   :  { %124 = vmatpush.xpose.msra.mxu1 %v123_v28  ;;  %75 = vmatpush.xpose.msra.mxu0 %v563_v14  ;;  %v165_v16 = vand.u32 4294901760, %v164_v1  ;;  %v187_v41 = vand.u32 4294901760, %v692_v32 }
  0x1f   :  { %271 = vmatpush.xpose.msra.mxu3 %v563_v14  ;;  %v171_v28 = vand.u32 4294901760, %v170_v19  ;;  %v177_v38 = vand.u32 4294901760, %v176_v26 }
  0x20   :  { %222 = vmatpush.xpose.msra.mxu2 %v586_v25  ;;  %v188_v50 = vsub.f32 %v692_v32, %v187_v41 }
  0x22   :  { %130 = vmatpush.xpose.msra.mxu1 %v129_v34  ;;  %77 = vmatpush.xpose.msra.mxu0 %v578_v21  ;;  %v694_v34 = vand.u32 4294901760, %v47_v23  ;;  %v189_v56 = vand.u32 4294901760, %v188_v50 }
  0x23   :  { %273 = vmatpush.xpose.msra.mxu3 %v578_v21 }
  0x24   :  { %225 = vmatpush.xpose.msra.mxu2 %v598_v31  ;;  %v704_v44 = vsub.f32 %v47_v23, %v694_v34 }
  0x26   :  { %136 = vmatpush.xpose.msra.mxu1 %v135_v40  ;;  %79 = vmatpush.xpose.msra.mxu0 %v590_v27  ;;  %v182_v40 = vsub.f32 %v680_v20, %v181_v29  ;;  %v193_v51 = vand.u32 4294901760, %v704_v44 }
  0x27   :  { %275 = vmatpush.xpose.msra.mxu3 %v590_v27 }
  0x28   :  { %228 = vmatpush.xpose.msra.mxu2 %v610_v37  ;;  %v183_v47 = vand.u32 4294901760, %v182_v40 }
  0x2a   :  { %142 = vmatpush.xpose.msra.mxu1 %v141_v46  ;;  %81 = vmatpush.xpose.msra.mxu0 %v602_v33  ;;  %v706_v46 = vand.u32 4294901760, %v46_v35 }
  0x2b   :  { %277 = vmatpush.xpose.msra.mxu3 %v602_v33 }
  0x2c   :  { %231 = vmatpush.xpose.msra.mxu2 %v615_v39 }
  0x2e   :  { %148 = vmatpush.xpose.msra.mxu1 %v147_v52  ;;  %83 = vmatpush.xpose.msra.mxu0 %v622_v43  ;;  %v198_v52 = vsub.f32 %v46_v35, %v706_v46 }
  0x2f   :  { %279 = vmatpush.xpose.msra.mxu3 %v622_v43 }
  0x30   :  { %234 = vmatpush.xpose.msra.mxu2 %v632_v48  ;;  %v199_v59 = vand.u32 4294901760, %v198_v52 }
  0x32   :  { %154 = vmatpush.xpose.msra.mxu1 %v153_v58  ;;  %85 = vmatpush.xpose.msra.mxu0 %v634_v49  ;;  %v194_v58 = vsub.f32 %v704_v44, %v193_v51 }
  0x33   :  { %281 = vmatpush.xpose.msra.mxu3 %v634_v49 }
  0x34   :  { %237 = vmatpush.xpose.msra.mxu2 %v644_v54  ;;  %v195_v62 = vand.u32 4294901760, %v194_v58 }
  0x36   :  { %160 = vmatpush.xpose.msra.mxu1 %v159_v0  ;;  %87 = vmatpush.xpose.msra.mxu0 %v646_v55  ;;  %v200_v0 = vsub.f32 %v198_v52, %v199_v59 }
  0x37   :  { %283 = vmatpush.xpose.msra.mxu3 %v646_v55 }
  0x38   :  { %240 = vmatpush.xpose.msra.mxu2 %v658_v61  ;;  %v201_v1 = vand.u32 4294901760, %v200_v0 }
  0x3a   :  { %166 = vmatpush.xpose.msra.mxu1 %v165_v16  ;;  %89 = vmatpush.xpose.msra.mxu0 %v650_v57 }
  0x3b   :  { %285 = vmatpush.xpose.msra.mxu3 %v650_v57 }
  0x3c   :  { %243 = vmatpush.xpose.msra.mxu2 %v663_v63 }
  0x3e   :  { %172 = vmatpush.xpose.msra.mxu1 %v171_v28  ;;  %91 = vmatpush.xpose.msra.mxu0 %v670_v6 }
  0x3f   :  { %287 = vmatpush.xpose.msra.mxu3 %v670_v6 }
  0x40   :  { %246 = vmatpush.xpose.msra.mxu2 %v680_v20 }
  0x42   :  { %178 = vmatpush.xpose.msra.mxu1 %v177_v38  ;;  %93 = vmatpush.xpose.msra.mxu0 %v682_v22 }
  0x43   :  { %289 = vmatpush.xpose.msra.mxu3 %v682_v22 }
  0x44   :  { %249 = vmatpush.xpose.msra.mxu2 %v692_v32 }
  0x46   :  { %184 = vmatpush.xpose.msra.mxu1 %v183_v47  ;;  %95 = vmatpush.xpose.msra.mxu0 %v694_v34 }
  0x47   :  { %291 = vmatpush.xpose.msra.mxu3 %v694_v34 }
  0x48   :  { %252 = vmatpush.xpose.msra.mxu2 %v704_v44 }
  0x4a   :  { %190 = vmatpush.xpose.msra.mxu1 %v189_v56  ;;  %97 = vmatpush.xpose.msra.mxu0 %v706_v46 }
  0x4b   :  { %293 = vmatpush.xpose.msra.mxu3 %v706_v46 }
  0x4c   :  { %255 = vmatpush.xpose.msra.mxu2 %v198_v52 }
  0x4e   :  { %304 = vmatpush.xpose.msrb.mxu0 %v109_v12  ;;  %196 = vmatpush.xpose.msra.mxu1 %v195_v62  ;;  %v98_v12 = vand.u32 4294901760, %v45_v7 }
  0x52   :  { %308 = vmatpush.xpose.msrb.mxu0 %v115_v13  ;;  %202 = vmatpush.xpose.msra.mxu1 %v201_v1 }
  0x55   :  { %204 = vmatmul.f32.vlgmr.msra.gmra.mxu1 %v98_v12 }
  0x56   :  { %371 = vmatpush.xpose.msrb.mxu1 %v541_v3  ;;  %312 = vmatpush.xpose.msrb.mxu0 %v121_v17  ;;  %v99_v3 = vsub.f32 %v45_v7, %v98_v12 }
  0x58   :  { %258 = vmatmul.f32.vlgmr.msra.gmra.mxu2 %v99_v3  ;;  %v100_v8 = vand.u32 4294901760, %v99_v3 }
  0x5a   :  { %373 = vmatpush.xpose.msrb.mxu1 %v543_v4  ;;  %316 = vmatpush.xpose.msrb.mxu0 %v127_v24  ;;  %v101_v4 = vsub.f32 %v99_v3, %v100_v8 }
  0x5b   :  { %297 = vmatmul.f32.vlgmr.msra.gmra.mxu3 %v100_v8 }
  0x5e   :  { %375 = vmatpush.xpose.msrb.mxu1 %v545_v5  ;;  %320 = vmatpush.xpose.msrb.mxu0 %v133_v30  ;;  %v102_v5 = vand.u32 4294901760, %v101_v4 }
  0x60   :  { %103 = vmatmul.f32.vlgmr.msra.gmra.mxu0 %v102_v5 }
  0x62   :  { %377 = vmatpush.xpose.msrb.mxu1 %v557_v10  ;;  %324 = vmatpush.xpose.msrb.mxu0 %v139_v36 }
  0x66   :  { %379 = vmatpush.xpose.msrb.mxu1 %v563_v14  ;;  %328 = vmatpush.xpose.msrb.mxu0 %v145_v42 }
  0x6a   :  { %381 = vmatpush.xpose.msrb.mxu1 %v578_v21  ;;  %332 = vmatpush.xpose.msrb.mxu0 %v151_v45 }
  0x6e   :  { %383 = vmatpush.xpose.msrb.mxu1 %v590_v27  ;;  %336 = vmatpush.xpose.msrb.mxu0 %v157_v53 }
  0x72   :  { %385 = vmatpush.xpose.msrb.mxu1 %v602_v33  ;;  %340 = vmatpush.xpose.msrb.mxu0 %v163_v60 }
  0x76   :  { %387 = vmatpush.xpose.msrb.mxu1 %v622_v43  ;;  %344 = vmatpush.xpose.msrb.mxu0 %v169_v2 }
  0x7a   :  { %389 = vmatpush.xpose.msrb.mxu1 %v634_v49  ;;  %348 = vmatpush.xpose.msrb.mxu0 %v175_v15 }
  0x7e   :  { %391 = vmatpush.xpose.msrb.mxu1 %v646_v55  ;;  %352 = vmatpush.xpose.msrb.mxu0 %v181_v29 }
  0x82   :  { %393 = vmatpush.xpose.msrb.mxu1 %v650_v57  ;;  %356 = vmatpush.xpose.msrb.mxu0 %v187_v41 }
  0x86   :  { %395 = vmatpush.xpose.msrb.mxu1 %v670_v6  ;;  %360 = vmatpush.xpose.msrb.mxu0 %v193_v51 }
  0x8a   :  { %397 = vmatpush.xpose.msrb.mxu1 %v682_v22  ;;  %364 = vmatpush.xpose.msrb.mxu0 %v199_v59 }
  0x8d   :  { %366 = vmatmul.f32.vlgmr.msrb.gmra.mxu0 %v98_v12 }
  0x8e   :  { %399 = vmatpush.xpose.msrb.mxu1 %v694_v34 }
  0x92   :  { %401 = vmatpush.xpose.msrb.mxu1 %v706_v46 }
  0x95   :  { %403 = vmatmul.f32.vlgmr.msrb.gmra.mxu1 %v98_v12 }
  0xd2   :  { %v205_v14 = vpop.f32.mrf.mxu1 }
  0xdb   :  { %v259_v18 = vpop.f32.mrf.mxu2 }
  0xdd   :  { %v104_v10 = vpop.f32.mrf.mxu0 }
  0xde   :  { %v105_v13 = vadd.f32 %v431_v9, %v104_v10  ;;  %v298_v24 = vpop.f32.mrf.mxu3 }
  0xe0   :  { %v206_v17 = vadd.f32 %v205_v14, %v105_v13 }
  0xe2   :  { %v260_v21 = vadd.f32 %v259_v18, %v206_v17 }
  0xe4   :  { %v299_v25 = vadd.f32 %v298_v24, %v260_v21 }
 0x10a   :  { %v367_v27 = vpop.f32.mrf.mxu0 }
 0x10b   :  { %v368_v30 = vadd.f32 %v367_v27, %v299_v25 }
 0x112   :  { %v404_v31 = vpop.f32.mrf.mxu1 }
 0x113   :  { %v405_v33 = vadd.f32 %v404_v31, %v368_v30 }
 0x115   :  { %407 = vst [vmem:[#allocation7] sm:$0xff] %v405_v33 }
 0x116   :  { %418 = dma.vmem_to_hbm [thread:$0]  %s414_s25, 128, %s416_s28, [#allocation4]  }
 0x117   :  { %508 = dma.done.wait [#allocation4], 128  }
 0x118   :  { %509 = vsyncadd [#allocation4], 4294967168 }
 0x119   :  { %423 = vsyncpa [#allocation3], 1 }
 0x11a   :  { %424 = vsyncpa [#allocation6], 1 }
 0x11b   :  { %425 = vsyncpa [#allocation4], 1 }

</bundles_post_ra>
